<compile_context>
chip_gen: v7x
topology: tpu7x:2x2x1
jax: 0.10.0
libtpu: 0.0.40
codegen_flags: <defaults>
</compile_context>

<pallas_src>
import functools
import math

import numpy as np
import jax
import jax.numpy as jnp
from jax import lax
from jax.experimental import pallas as pl
from jax.experimental.pallas import tpu as pltpu

NEG_SLOPE = 0.2

# (in_channels, out_channels, block type) — mirrors FNet.__init__.
BLOCK_DEFS = [(6, 32, "maxpool"), (32, 64, "maxpool"), (64, 128, "maxpool"),
              (128, 256, "bilinear"), (256, 128, "bilinear"), (128, 64, "bilinear")]


# ----------------------------------------------------------------------------
# Static helper matrices (numpy, built once at parameter-preparation time)
# ----------------------------------------------------------------------------
def _up_coeffs(n):
    """align_corners=False source indices / weights for x2 upsampling."""
    out = np.arange(2 * n, dtype=np.float64)
    src = np.maximum((out + 0.5) * 0.5 - 0.5, 0.0)
    i0 = np.minimum(np.floor(src).astype(np.int64), n - 1)
    i1 = np.minimum(i0 + 1, n - 1)
    frac = (src - i0).astype(np.float32)
    return i0, i1, (1.0 - frac).astype(np.float32), frac


def _bilinear_matrix(H, W):
    """(2H*2W, H*W) matrix matching F.interpolate(scale=2, 'bilinear', align_corners=False)."""
    i0, i1, wh0, wh1 = _up_coeffs(H)
    j0, j1, ww0, ww1 = _up_coeffs(W)
    Ho, Wo = 2 * H, 2 * W
    U = np.zeros((Ho * Wo, H * W), np.float32)
    for oi in range(Ho):
        for oj in range(Wo):
            q = oi * Wo + oj
            U[q, i0[oi] * W + j0[oj]] += wh0[oi] * ww0[oj]
            U[q, i0[oi] * W + j1[oj]] += wh0[oi] * ww1[oj]
            U[q, i1[oi] * W + j0[oj]] += wh1[oi] * ww0[oj]
            U[q, i1[oi] * W + j1[oj]] += wh1[oi] * ww1[oj]
    return U


def _pool_select_matrix(H, W):
    """(H/2*W/2, H*W) 0/1 matrix selecting the top-left corner of every 2x2 window."""
    Ho, Wo = H // 2, W // 2
    D = np.zeros((Ho * Wo, H * W), np.float32)
    for io in range(Ho):
        for jo in range(Wo):
            D[io * Wo + jo, (2 * io) * W + 2 * jo] = 1.0
    return D


def _shift_matrices(H, W):
    """(9, H*W, H*W) 0/1 tap-shift matrices (only used when H*W < 8)."""
    HW = H * W
    S = np.zeros((9, HW, HW), np.float32)
    k = 0
    for dh in (-1, 0, 1):
        for dw in (-1, 0, 1):
            for i in range(H):
                for j in range(W):
                    ii, jj = i + dh, j + dw
                    if 0 <= ii < H and 0 <= jj < W:
                        S[k, i * W + j, ii * W + jj] = 1.0
            k += 1
    return S


# ----------------------------------------------------------------------------
# In-kernel helpers (operate on VMEM-resident values)
# ----------------------------------------------------------------------------
@functools.lru_cache(maxsize=None)
def _roll_matches_np():
    """Verify pltpu.roll's shift convention once on-device (expected: np.roll)."""
    def k(x_ref, o_ref):
        o_ref[...] = pltpu.roll(x_ref[...], 1, 0)

    x = jnp.arange(8 * 128, dtype=jnp.float32).reshape(8, 128)
    y = pl.pallas_call(k, out_shape=jax.ShapeDtypeStruct((8, 128), jnp.float32))(x)
    return bool(jnp.allclose(y, jnp.roll(x, 1, axis=0)))


def _row_shift(v, s, n):
    """Return u with u[p] = v[(p + s) % n] along axis 0 (sublane roll on the XLU)."""
    a = (-s) % n if _roll_matches_np() else s % n
    if a == 0:
        return v
    return pltpu.roll(v, shift=a, axis=0)


def _leaky(y):
    # leaky_relu(y, 0.2) == max(y, 0.2*y) for 0 < slope < 1 (no select needed).
    return jnp.maximum(y, NEG_SLOPE * y)


def _conv3x3_flat(h, w_ref, b_ref, H, W, s_ref=None):
    """3x3 / stride 1 / pad 1 conv on a flattened (H*W, Cin) f32 activation.

    w_ref: (9, Cin, Cout) bf16 ref, b_ref: (1, Cout) f32 ref.  Each of the 9 taps
    is built in registers (roll + edge mask, or a 0/1 shift matmul when H*W < 8)
    and feeds one bf16 MXU matmul with f32 accumulation.  Returns the
    (H*W, Cout) f32 pre-activation (bias included, bias folded into the acc).
    """
    HW = H * W
    if s_ref is None:
        assert W & (W - 1) == 0, "W must be a power of two"
        lw = int(round(math.log2(W)))
        p = lax.broadcasted_iota(jnp.int32, (HW, 1), 0)
        row = p >> lw
        col = p & (W - 1)

    acc = None
    k = 0
    for dh in (-1, 0, 1):
        for dw in (-1, 0, 1):
            if s_ref is not None:
                # Tiny spatial stage: tap via exact 0/1 shift matmul.
                tap = jnp.dot(s_ref[k], h, preferred_element_type=jnp.float32)
            elif dh == 0 and dw == 0:
                tap = h
            else:
                rolled = _row_shift(h, dh * W + dw, HW)
                conds = []
                if dh < 0:
                    conds.append(row >= -dh)
                if dh > 0:
                    conds.append(row < H - dh)
                if dw < 0:
                    conds.append(col >= -dw)
                if dw > 0:
                    conds.append(col < W - dw)
                valid = conds[0]
                for c in conds[1:]:
                    valid = valid & c
                tap = jnp.where(valid, rolled, 0.0)
            d = jnp.dot(tap.astype(jnp.bfloat16), w_ref[k],
                        preferred_element_type=jnp.float32)
            acc = d if acc is None else acc + d
            k += 1
    # TODO(synk): fold the 9 taps into one K=9*Cin matmul for better MXU
    # utilisation at small Cin (requires unaligned lane-dim concat in-kernel).
    return acc + b_ref[...]


# ----------------------------------------------------------------------------
# Fused whole-network kernel
# ----------------------------------------------------------------------------
def _fnet_kernel(*refs, block_meta, head_hw):
    o_ref = refs[-1]
    in_refs = refs[:-1]
    pos = 0

    def nxt():
        nonlocal pos
        r = in_refs[pos]
        pos += 1
        return r

    x_ref = nxt()
    h = x_ref[0].astype(jnp.float32)                    # (H*W, Cin), flat NHWC

    for (H, W, typ, has_smat) in block_meta:
        w1, b1, w2, b2, aux = nxt(), nxt(), nxt(), nxt(), nxt()
        smat = nxt() if has_smat else None
        h = _leaky(_conv3x3_flat(h, w1, b1, H, W, smat))   # ConvLeaky.conv1
        h = _leaky(_conv3x3_flat(h, w2, b2, H, W, smat))   # ConvLeaky.conv2
        HW = H * W
        if typ == "maxpool":
            # 2x2 window max at every top-left corner, then exact 0/1 decimation.
            m = jnp.maximum(h, _row_shift(h, 1, HW))
            m = jnp.maximum(m, _row_shift(m, W, HW))
            h = jnp.dot(aux[...], m, preferred_element_type=jnp.float32)
        else:
            # bilinear x2 upsample as a static interpolation matmul.
            h = jnp.dot(aux[...], h, preferred_element_type=jnp.float32)

    H, W = head_hw
    w1, b1, w2, b2 = nxt(), nxt(), nxt(), nxt()
    h = _leaky(_conv3x3_flat(h, w1, b1, H, W))          # FNet.conv1 + leaky
    h = jnp.tanh(_conv3x3_flat(h, w2, b2, H, W))        # FNet.conv2 + tanh
    # Final store is (H*W, 2): lane-sparse but only ~2 KB, so not worth padding.
    o_ref[0] = h.astype(o_ref.dtype)


# ----------------------------------------------------------------------------
# Parameters & wrapper
# ----------------------------------------------------------------------------
def _init_conv(key, cin, cout):
    kw, kb = jax.random.split(key)
    bound = 1.0 / np.sqrt(cin * 9)
    w = jax.random.uniform(kw, (3, 3, cin, cout), jnp.float32, -bound, bound)
    b = jax.random.uniform(kb, (cout,), jnp.float32, -bound, bound)
    return w, b


def init_fnet_params(key):
    params = {"blocks": []}
    for cin, cout, _ in BLOCK_DEFS:
        key, k1, k2 = jax.random.split(key, 3)
        params["blocks"].append(_init_conv(k1, cin, cout) + _init_conv(k2, cout, cout))
    key, k1, k2 = jax.random.split(key, 3)
    params["head1"] = _init_conv(k1, 64, 32)
    params["head2"] = _init_conv(k2, 32, 2)
    return params


def prepare_params(params, spatial=(16, 16)):
    """Cast/reshape params into kernel-ready form (done once, outside jit)."""
    def conv_wb(w, b):
        cin, cout = w.shape[2], w.shape[3]
        return (jnp.asarray(w.reshape(9, cin, cout), jnp.bfloat16),
                jnp.asarray(b.reshape(1, cout), jnp.float32))

    prep = {"blocks": [], "head": None}
    H, W = spatial
    for (cin, cout, typ), (w1, b1, w2, b2) in zip(BLOCK_DEFS, params["blocks"]):
        e = {}
        e["w1"], e["b1"] = conv_wb(w1, b1)
        e["w2"], e["b2"] = conv_wb(w2, b2)
        if H * W < 8:                       # too small for sublane rolls
            e["smat"] = jnp.asarray(_shift_matrices(H, W))
        if typ == "maxpool":
            e["aux"] = jnp.asarray(_pool_select_matrix(H, W))
            H, W = H // 2, W // 2
        else:
            e["aux"] = jnp.asarray(_bilinear_matrix(H, W))
            H, W = 2 * H, 2 * W
        prep["blocks"].append(e)
    h1w, h1b = conv_wb(*params["head1"])
    h2w, h2b = conv_wb(*params["head2"])
    prep["head"] = {"w1": h1w, "b1": h1b, "w2": h2w, "b2": h2b}
    return prep


def fnet_forward(x, prep):
    """x: (N, H, W, 6) NHWC (== NCHW (N, 6, H, W) reference).  Returns (N, H, W, 2)."""
    N, H0, W0, C0 = x.shape
    inputs = [x.reshape(N, H0 * W0, C0)]
    in_specs = [pl.BlockSpec((1, H0 * W0, C0), lambda n: (n, 0, 0))]

    def add_full(arr):
        inputs.append(arr)
        in_specs.append(pl.BlockSpec(arr.shape, lambda n, nd=arr.ndim: (0,) * nd))

    block_meta = []
    H, W = H0, W0
    for (_, _, typ), e in zip(BLOCK_DEFS, prep["blocks"]):
        for name in ("w1", "b1", "w2", "b2", "aux"):
            add_full(e[name])
        has_smat = "smat" in e
        if has_smat:
            add_full(e["smat"])
        block_meta.append((H, W, typ, has_smat))
        H, W = (H // 2, W // 2) if typ == "maxpool" else (2 * H, 2 * W)

    for name in ("w1", "b1", "w2", "b2"):
        add_full(prep["head"][name])
    cout_final = prep["head"]["w2"].shape[-1]

    kernel = functools.partial(_fnet_kernel, block_meta=tuple(block_meta),
                               head_hw=(H, W))
    out = pl.pallas_call(
        kernel,
        out_shape=jax.ShapeDtypeStruct((N, H * W, cout_final), jnp.float32),
        grid=(N,),
        in_specs=in_specs,
        out_specs=pl.BlockSpec((1, H * W, cout_final), lambda n: (n, 0, 0)),
        compiler_params=pltpu.CompilerParams(
            dimension_semantics=("parallel",)),  # batch -> both v7x TensorCores
    )(*inputs)
    return out.reshape(N, H, W, cout_final)


# ----------------------------------------------------------------------------
# Pure-JAX reference (for a loose numerical self-check; bf16 MXU => ~1e-2 tol)
# ----------------------------------------------------------------------------
def _ref_conv3x3(x, w, b):
    y = lax.conv_general_dilated(x, w, (1, 1), "SAME",
                                 dimension_numbers=("NHWC", "HWIO", "NHWC"))
    return y + b


def _ref_leaky(x):
    return jnp.where(x >= 0, x, NEG_SLOPE * x)


def _ref_maxpool(x):
    return lax.reduce_window(x, -jnp.inf, lax.max, (1, 2, 2, 1), (1, 2, 2, 1), "VALID")


def _ref_upsample(x):
    N, H, W, C = x.shape
    i0, i1, wh0, wh1 = _up_coeffs(H)
    j0, j1, ww0, ww1 = _up_coeffs(W)
    g = lambda ii, jj: x[:, ii][:, :, jj]
    wh0 = wh0[None, :, None, None]
    wh1 = wh1[None, :, None, None]
    ww0 = ww0[None, None, :, None]
    ww1 = ww1[None, None, :, None]
    return (wh0 * ww0 * g(i0, j0) + wh0 * ww1 * g(i0, j1)
            + wh1 * ww0 * g(i1, j0) + wh1 * ww1 * g(i1, j1))


def fnet_reference(x, params):
    h = x
    for (w1, b1, w2, b2), (_, _, typ) in zip(params["blocks"], BLOCK_DEFS):
        h = _ref_leaky(_ref_conv3x3(h, w1, b1))
        h = _ref_leaky(_ref_conv3x3(h, w2, b2))
        h = _ref_maxpool(h) if typ == "maxpool" else _ref_upsample(h)
    w, b = params["head1"]
    h = _ref_leaky(_ref_conv3x3(h, w, b))
    w, b = params["head2"]
    return jnp.tanh(_ref_conv3x3(h, w, b))


if __name__ == "__main__":
    _roll_matches_np()        # prime the roll-convention probe before jitting

    key = jax.random.PRNGKey(0)
    kx, kp = jax.random.split(key)
    # NHWC input, equivalent to PyTorch NCHW (2, 6, 16, 16)
    x = jax.random.normal(kx, (2, 16, 16, 6), dtype=jnp.float32)
    params = init_fnet_params(kp)
    prep = prepare_params(params, spatial=(16, 16))

    fwd = jax.jit(fnet_forward)
    out = jax.block_until_ready(fwd(x, prep))
    assert out.shape == (2, 16, 16, 2), out.shape
    assert bool(jnp.all(jnp.isfinite(out)))

    ref = jax.block_until_ready(jax.jit(fnet_reference)(x, params))
    err = float(jnp.max(jnp.abs(out - ref)))
    assert err < 5e-2, f"kernel/reference mismatch: max abs err = {err}"

    print("KERNEL_OK")
</pallas_src>

<mosaic_0001>
module attributes {stable_mosaic.version = 11 : i64} {
  func.func @k(%arg0: memref<8x128xf32, #tpu.memory_space<vmem>>, %arg1: memref<8x128xf32, #tpu.memory_space<vmem>>) attributes {dimension_semantics = [], scalar_prefetch = 0 : i64, scratch_operands = 0 : i64, tpu.core_type = #tpu.core_type<tc>} {
    %c0 = arith.constant 0 : index
    %c0_0 = arith.constant 0 : index
    %0 = vector.load %arg0[%c0, %c0_0] : memref<8x128xf32, #tpu.memory_space<vmem>>, vector<8x128xf32>
    %c1_i32 = arith.constant 1 : i32
    %1 = tpu.dynamic_rotate %0 by %c1_i32 dim 0 : vector<8x128xf32>, i32 -> vector<8x128xf32>
    %c0_1 = arith.constant 0 : index
    %c0_2 = arith.constant 0 : index
    %2 = vector.load %arg1[%c0_1, %c0_2] : memref<8x128xf32, #tpu.memory_space<vmem>>, vector<8x128xf32>
    tpu.vector_store %arg1[%c0_1, %c0_2], %1 {strides = array<i32>} : memref<8x128xf32, #tpu.memory_space<vmem>>, vector<8x128xf32>,
    return
  }
}

</mosaic_0001>

<bundles_post_ra>
// kernel: tpu_custom_call.1
= control target key start
LH: loop header
LB: loop body
LE: loop exit
PB: predicated region body
PF: predicated region fallthrough
CT: control target
= control target key end

     0   :  { %6 = vsyncpa [#allocation3], 0  ;;  %s125_s0 = inlined_call_operand.hbm [shape: f32[8,128], index: 0, kind: input, shape index: {}]   ;;  %s126_s1 = inlined_call_operand.hbm [shape: f32[8,128], index: 1, kind: output, shape index: {}]  }
   0x1   :  { %7 = vsyncpa [#allocation4], 0  ;;  %s89_s6 = smov [#allocation2]   ;;  %s41_s10 = scalar_lea.hbm %s125_s0, 128 }
   0x2   :  { %s14_s7 = sshll.u32 %s89_s6, 4  ;;  %p42_p0 = scmp.ne.s32.totalorder %s125_s0, %s41_s10  ;;  %s15_s7 = int_to_ptr.vmem [resolvable:$true] %s14_s7 }
   0x3   :  { %p45_p1 = scmp.lt.u32.totalorder %s41_s10, %s125_s0 }
   0x5   :  { %p47_p2 = pnand %p45_p1, %p42_p0 }
   0x7   :  { %50 = shalt.err (!%p47_p2)
}
   0x8   :  { %s51_s15 = scalar_lea.vmem %s15_s7, 128  ;;  %p56_p4 = scmp.lt.s32.totalorder %s15_s7, %s15_s7 }
   0x9   :  { %p52_p3 = scmp.ne.s32.totalorder %s15_s7, %s51_s15  ;;  %p57_p5 = scmp.lt.s32.totalorder %s51_s15, %s51_s15 }
   0xb   :  { %p58_p6 = por %p57_p5, %p56_p4 }
   0xd   :  { %p59_p7 = pnand %p58_p6, %p52_p3 }
   0xf   :  { %62 = shalt.err (!%p59_p7)
}
  0x10   :  { %17 = dma.hbm_to_vmem [thread:$0]  %s125_s0, 128, %s15_s7, [#allocation3]  }
  0x11   :  { %85 = dma.done.wait [#allocation3], 128  }
  0x12   :  { %86 = vsyncadd [#allocation3], 4294967168  ;;  %s90_s18 = smov [#allocation5]   ;;  %v21_v0 = vld [vmem:[#allocation2] sm:$0xff] }
  0x13   :  { %s30_s19 = sshll.u32 %s90_s18, 4  ;;  %v22_v1 = vrot.slane %v21_v0, 7  ;;  %s31_s19 = int_to_ptr.vmem [resolvable:$true] %s30_s19 }
  0x14   :  { %s63_s20 = scalar_lea.vmem %s31_s19, 128  ;;  %p68_p9 = scmp.lt.s32.totalorder %s31_s19, %s31_s19 }
  0x15   :  { %23 = vst [vmem:[#allocation5] sm:$0xff] %v22_v1  ;;  %p64_p8 = scmp.ne.s32.totalorder %s31_s19, %s63_s20  ;;  %p69_p10 = scmp.lt.s32.totalorder %s63_s20, %s63_s20 }
  0x17   :  { %p70_p11 = por %p69_p10, %p68_p9 }
  0x19   :  { %p71_p12 = pnand %p70_p11, %p64_p8 }
  0x1b   :  { %74 = shalt.err (!%p71_p12)
}
  0x1c   :  { %s75_s23 = scalar_lea.hbm %s126_s1, 128 }
  0x1d   :  { %p76_p13 = scmp.ne.s32.totalorder %s126_s1, %s75_s23  ;;  %p79_p0 = scmp.lt.u32.totalorder %s75_s23, %s126_s1 }
  0x1f   :  { %p81_p1 = pnand %p79_p0, %p76_p13 }
  0x21   :  { %84 = shalt.err (!%p81_p1)
}
  0x22   :  { %33 = dma.vmem_to_hbm [thread:$0]  %s31_s19, 128, %s126_s1, [#allocation4]  }
  0x23   :  { %87 = dma.done.wait [#allocation4], 128  }
  0x24   :  { %88 = vsyncadd [#allocation4], 4294967168 }
  0x25   :  { %37 = vsyncpa [#allocation3], 1 }
  0x26   :  { %38 = vsyncpa [#allocation4], 1 }

</bundles_post_ra>
